<compile_context>
chip_gen: v7x
topology: tpu7x:2x2x1
jax: 0.10.0
libtpu: 0.0.40
codegen_flags: <defaults>
</compile_context>

<pallas_src>
import functools

import jax
import jax.numpy as jnp
from jax.experimental import pallas as pl
from jax.experimental.pallas import tpu as pltpu


def _round_up(x: int, m: int) -> int:
    return ((x + m - 1) // m) * m


def _round_down(x: int, m: int) -> int:
    return (x // m) * m


def _cdiv(a: int, b: int) -> int:
    return -(-a // b)


def _vmem_capacity_bytes() -> int:
    """Physical per-core VMEM; falls back to the conservative v7x figure (64 MiB)."""
    try:
        cap = getattr(pltpu.get_tpu_info(), "vmem_capacity_bytes", None)
        if cap:
            return int(cap)
    except Exception:
        pass
    try:
        kind = jax.devices()[0].device_kind.lower()
        if "v5" in kind or "v6" in kind:
            return 128 * 2**20
    except Exception:
        pass
    return 64 * 2**20


def autorec_fwd_kernel(x_ref, w1t_ref, b1_ref, w2t_ref, b2_ref, out_ref):
    """Fused AutoRec forward on one batch tile.

    Refs (VMEM):
      x_ref   : (TB, Dp)  batch tile of masked user/item vectors (bf16 or f32)
      w1t_ref : (Dp, Hp)  inputLayer.weight, pre-transposed, resident
      b1_ref  : (1, Hp)   inputLayer.bias (f32), resident
      w2t_ref : (Hp, Dp)  outputLayer.weight, pre-transposed, resident
      b2_ref  : (1, Dp)   outputLayer.bias (f32), resident
      out_ref : (TB, Dp)  reconstruction tile (lane-dense store)
    """
    # Hidden layer: Linear + Sigmoid.  MXU with f32 accumulation; the bias add and
    # the sigmoid (exp goes to the EUP) stay in f32.
    pre_h = jnp.dot(x_ref[...], w1t_ref[...], preferred_element_type=jnp.float32)
    h = jax.nn.sigmoid(pre_h + b1_ref[...])                     # (TB, Hp) f32

    # Output layer: Linear (identity activation), f32 accumulation + epilogue.
    y = jnp.dot(h.astype(w2t_ref.dtype), w2t_ref[...],
                preferred_element_type=jnp.float32)
    out_ref[...] = (y + b2_ref[...]).astype(out_ref.dtype)


@functools.partial(jax.jit, static_argnames=("batch_tile", "use_bf16", "out_dtype"))
def autorec_forward(x, w1, b1, w2, b2, *, batch_tile=None, use_bf16=True,
                    out_dtype=None):
    """AutoRec forward: sigmoid(x @ W1.T + b1) @ W2.T + b2.

    x: (B, D).  w1: (H, D), b1: (H,), w2: (D, H), b2: (D,) — PyTorch layouts.
    """
    B, D = x.shape
    H = w1.shape[0]
    out_dtype = jnp.dtype(out_dtype) if out_dtype is not None else x.dtype
    param_dtype = jnp.bfloat16 if use_bf16 else jnp.float32

    # Lane-pad feature dims to multiples of 128 (dense MXU K/N, unmasked stores).
    Dp = _round_up(D, 128)
    Hp = _round_up(H, 128)

    bpe_x = jnp.dtype(param_dtype).itemsize
    bpe_w = jnp.dtype(param_dtype).itemsize
    bpe_o = jnp.dtype(out_dtype).itemsize

    # ---- VMEM budget & batch-tile selection --------------------------------
    vmem_cap = int(0.85 * _vmem_capacity_bytes())      # headroom for compiler scratch
    resident = bpe_w * 2 * Hp * Dp + 4 * (Hp + Dp)     # single-buffered W1t/W2t + biases
    per_row = (2 * bpe_x * Dp                          # x tile, double-buffered
               + 2 * bpe_o * Dp                        # out tile, double-buffered
               + 4 * (Hp + Dp))                        # f32 intermediates headroom
    avail = vmem_cap - resident - (2 << 20)
    if avail < 8 * per_row:
        # TODO(synk): add a D-tiling grid axis (+ f32 VMEM accumulator) for input_dim
        # large enough that both weight matrices cannot stay VMEM-resident.
        raise NotImplementedError(
            "AutoRec weights too large for resident-weight kernel on this TPU; "
            "D-tiling path not implemented.")
    tb_budget = min(int(avail // per_row), 2048)
    tb_budget = (_round_down(tb_budget, 128) if tb_budget >= 128
                 else _round_down(tb_budget, 8))

    if batch_tile is not None:
        TB = max(8, _round_up(int(batch_tile), 8))
    elif B <= tb_budget:
        if B >= 512:
            TB = _round_up(_cdiv(B, 2), 8)   # >= 2 parallel steps (v7x: both TCs)
        else:
            TB = _round_up(B, 8)             # single grid step, minimal padding
    else:
        TB = int(tb_budget)
    grid_b = _cdiv(B, TB)
    Bp = grid_b * TB

    # ---- pad / cast / transpose params (one-time HBM copies, fused by XLA) ----
    xk = jnp.pad(x, ((0, Bp - B), (0, Dp - D))).astype(param_dtype)
    w1t = jnp.pad(w1.T, ((0, Dp - D), (0, Hp - H))).astype(param_dtype)   # (Dp, Hp)
    w2t = jnp.pad(w2.T, ((0, Hp - H), (0, Dp - D))).astype(param_dtype)   # (Hp, Dp)
    b1r = jnp.pad(b1, (0, Hp - H)).astype(jnp.float32).reshape(1, Hp)
    b2r = jnp.pad(b2, (0, Dp - D)).astype(jnp.float32).reshape(1, Dp)

    est = resident + TB * per_row + (2 << 20)
    vmem_limit = int(min(max(est, 16 * 2**20), vmem_cap))

    def _resident(shape):
        # Constant index map -> fetched once, single-buffered (no double buffer).
        return pl.BlockSpec(shape, lambda i: (0, 0), pipeline_mode=pl.Buffered(1))

    out = pl.pallas_call(
        autorec_fwd_kernel,
        out_shape=jax.ShapeDtypeStruct((Bp, Dp), out_dtype),
        grid_spec=pltpu.PrefetchScalarGridSpec(
            num_scalar_prefetch=0,
            grid=(grid_b,),
            in_specs=[
                # x streams per batch tile.  (Sweep pl.Buffered(3) here if the
                # x DMA is exposed at tile boundaries once TB is finalized.)
                pl.BlockSpec((TB, Dp), lambda i: (i, 0)),
                _resident((Dp, Hp)),     # W1^T: fetched once, resident
                _resident((1, Hp)),      # b1
                _resident((Hp, Dp)),     # W2^T: fetched once, resident
                _resident((1, Dp)),      # b2
            ],
            out_specs=pl.BlockSpec((TB, Dp), lambda i: (i, 0)),
        ),
        compiler_params=pltpu.CompilerParams(
            dimension_semantics=("parallel",),           # megacore sharding on v7x
            vmem_limit_bytes=vmem_limit,
        ),
        cost_estimate=pl.CostEstimate(
            flops=4 * Bp * Hp * Dp,                      # two matmuls
            transcendentals=Bp * Hp,                     # sigmoid exp
            bytes_accessed=(Bp * Dp * (bpe_x + bpe_o)
                            + 2 * Hp * Dp * bpe_w + 4 * (Hp + Dp)),
        ),
    )(xk, w1t, b1r, w2t, b2r)

    if Bp != B or Dp != D:
        out = out[:B, :D]
    return out


def init_params(key, input_dim, hidden_dim):
    """PyTorch nn.Linear default init: U(-1/sqrt(fan_in), 1/sqrt(fan_in))."""
    k1, k2, k3, k4 = jax.random.split(key, 4)
    bound1 = 1.0 / jnp.sqrt(input_dim)
    bound2 = 1.0 / jnp.sqrt(hidden_dim)
    w1 = jax.random.uniform(k1, (hidden_dim, input_dim), jnp.float32, -bound1, bound1)
    b1 = jax.random.uniform(k2, (hidden_dim,), jnp.float32, -bound1, bound1)
    w2 = jax.random.uniform(k3, (input_dim, hidden_dim), jnp.float32, -bound2, bound2)
    b2 = jax.random.uniform(k4, (input_dim,), jnp.float32, -bound2, bound2)
    return w1, b1, w2, b2


def autorec_forward_ref(x, w1, b1, w2, b2):
    """Pure-JAX f32 reference for correctness check."""
    h = jax.nn.sigmoid(x @ w1.T + b1)
    return h @ w2.T + b2


if __name__ == "__main__":
    # Non-128-multiple feature dims exercise the lane-padding path (D 300->384,
    # H 200->256); BATCH=24 collapses to a single 32-row grid step.
    INPUT_DIM = 300     # user/item vector length
    HIDDEN_DIM = 200    # hidden_layer_dim
    BATCH = 24          # batch of masked user/item vectors

    key = jax.random.PRNGKey(0)
    kx, kp = jax.random.split(key)

    w1, b1, w2, b2 = init_params(kp, INPUT_DIM, HIDDEN_DIM)
    x = jax.random.normal(kx, (BATCH, INPUT_DIM), jnp.float32)

    ref = autorec_forward_ref(x, w1, b1, w2, b2)

    # NOTE: the PyTorch forward's training-time `.detach()` loop on masked weight
    # entries is gradient bookkeeping with no forward-pass effect and is omitted.
    # TODO(synk): training-mode mask/detach logic has no forward-pass equivalent.

    # Default path: bf16 MXU operands, f32 accumulation/epilogue (loose tolerance).
    out = jax.block_until_ready(autorec_forward(x, w1, b1, w2, b2))
    assert out.shape == (BATCH, INPUT_DIM)
    assert jnp.allclose(out, ref, atol=2e-2, rtol=2e-2), "bf16 path mismatch vs ref"

    # f32 path: tight numerical validation of the kernel structure/padding.
    out_f32 = jax.block_until_ready(
        autorec_forward(x, w1, b1, w2, b2, use_bf16=False))
    assert jnp.allclose(out_f32, ref, atol=1e-5, rtol=1e-5), "f32 path mismatch vs ref"

    print("KERNEL_OK")
</pallas_src>

<mosaic_0001>
module attributes {stable_mosaic.version = 11 : i64} {
  func.func @autorec_fwd_kernel(%arg0: i32, %arg1: memref<24x384xbf16, #tpu.memory_space<vmem>>, %arg2: memref<384x256xbf16, #tpu.memory_space<vmem>>, %arg3: memref<1x256xf32, #tpu.memory_space<vmem>>, %arg4: memref<256x384xbf16, #tpu.memory_space<vmem>>, %arg5: memref<1x384xf32, #tpu.memory_space<vmem>>, %arg6: memref<24x384xf32, #tpu.memory_space<vmem>>) attributes {dimension_semantics = [#tpu.dimension_semantics<parallel>], iteration_bounds = array<i64: 1>, scalar_prefetch = 0 : i64, scratch_operands = 0 : i64, tpu.core_type = #tpu.core_type<tc>, window_params = [{transform_indices = @transform_0, window_bounds = array<i64: 24, 384>}, {pipeline_mode = #tpu.pipeline_mode<synchronous>, transform_indices = @transform_1, window_bounds = array<i64: 384, 256>}, {pipeline_mode = #tpu.pipeline_mode<synchronous>, transform_indices = @transform_2, window_bounds = array<i64: 1, 256>}, {pipeline_mode = #tpu.pipeline_mode<synchronous>, transform_indices = @transform_3, window_bounds = array<i64: 256, 384>}, {pipeline_mode = #tpu.pipeline_mode<synchronous>, transform_indices = @transform_4, window_bounds = array<i64: 1, 384>}, {transform_indices = @transform_5, window_bounds = array<i64: 24, 384>}]} {
    %c0 = arith.constant 0 : index
    %c0_0 = arith.constant 0 : index
    %0 = vector.load %arg1[%c0, %c0_0] : memref<24x384xbf16, #tpu.memory_space<vmem>>, vector<24x384xbf16>
    %c0_1 = arith.constant 0 : index
    %c0_2 = arith.constant 0 : index
    %1 = vector.load %arg2[%c0_1, %c0_2] : memref<384x256xbf16, #tpu.memory_space<vmem>>, vector<384x256xbf16>
    %cst = arith.constant dense<0.000000e+00> : vector<24x256xf32>
    %2 = tpu.matmul %0, %1, %cst {dimension_numbers = #tpu.dot_dimension_numbers<[1], [0], [0], [1], [0, 0, 1, 1], [], []>} : vector<24x384xbf16>, vector<384x256xbf16>, vector<24x256xf32> -> vector<24x256xf32>
    %c0_3 = arith.constant 0 : index
    %c0_4 = arith.constant 0 : index
    %3 = vector.load %arg3[%c0_3, %c0_4] : memref<1x256xf32, #tpu.memory_space<vmem>>, vector<1x256xf32>
    %4 = vector.broadcast %3 : vector<1x256xf32> to vector<24x256xf32>
    %5 = arith.addf %2, %4 : vector<24x256xf32>
    %6 = arith.negf %5 : vector<24x256xf32>
    %7 = math.exp %6 : vector<24x256xf32>
    %cst_5 = arith.constant 1.000000e+00 : f32
    %8 = vector.broadcast %cst_5 : f32 to vector<24x256xf32>
    %9 = arith.addf %8, %7 : vector<24x256xf32>
    %10 = arith.divf %8, %9 : vector<24x256xf32>
    %11 = arith.truncf %10 : vector<24x256xf32> to vector<24x256xbf16>
    %c0_6 = arith.constant 0 : index
    %c0_7 = arith.constant 0 : index
    %12 = vector.load %arg4[%c0_6, %c0_7] : memref<256x384xbf16, #tpu.memory_space<vmem>>, vector<256x384xbf16>
    %cst_8 = arith.constant dense<0.000000e+00> : vector<24x384xf32>
    %13 = tpu.matmul %11, %12, %cst_8 {dimension_numbers = #tpu.dot_dimension_numbers<[1], [0], [0], [1], [0, 0, 1, 1], [], []>} : vector<24x256xbf16>, vector<256x384xbf16>, vector<24x384xf32> -> vector<24x384xf32>
    %c0_9 = arith.constant 0 : index
    %c0_10 = arith.constant 0 : index
    %14 = vector.load %arg5[%c0_9, %c0_10] : memref<1x384xf32, #tpu.memory_space<vmem>>, vector<1x384xf32>
    %15 = vector.broadcast %14 : vector<1x384xf32> to vector<24x384xf32>
    %16 = arith.addf %13, %15 : vector<24x384xf32>
    %c0_11 = arith.constant 0 : index
    %c0_12 = arith.constant 0 : index
    %17 = vector.load %arg6[%c0_11, %c0_12] : memref<24x384xf32, #tpu.memory_space<vmem>>, vector<24x384xf32>
    tpu.vector_store %arg6[%c0_11, %c0_12], %16 {strides = array<i32>} : memref<24x384xf32, #tpu.memory_space<vmem>>, vector<24x384xf32>,
    return
  }
  func.func @transform_0(%arg0: i32) -> (i32, i32) {
    %c0_i32 = arith.constant 0 : i32
    %c0_i32_0 = arith.constant 0 : i32
    return %arg0, %c0_i32 : i32, i32
  }
  func.func @transform_1(%arg0: i32) -> (i32, i32) {
    %c0_i32 = arith.constant 0 : i32
    %c0_i32_0 = arith.constant 0 : i32
    %c0_i32_1 = arith.constant 0 : i32
    return %c0_i32, %c0_i32_0 : i32, i32
  }
  func.func @transform_2(%arg0: i32) -> (i32, i32) {
    %c0_i32 = arith.constant 0 : i32
    %c0_i32_0 = arith.constant 0 : i32
    %c0_i32_1 = arith.constant 0 : i32
    return %c0_i32, %c0_i32_0 : i32, i32
  }
  func.func @transform_3(%arg0: i32) -> (i32, i32) {
    %c0_i32 = arith.constant 0 : i32
    %c0_i32_0 = arith.constant 0 : i32
    %c0_i32_1 = arith.constant 0 : i32
    return %c0_i32, %c0_i32_0 : i32, i32
  }
  func.func @transform_4(%arg0: i32) -> (i32, i32) {
    %c0_i32 = arith.constant 0 : i32
    %c0_i32_0 = arith.constant 0 : i32
    %c0_i32_1 = arith.constant 0 : i32
    return %c0_i32, %c0_i32_0 : i32, i32
  }
  func.func @transform_5(%arg0: i32) -> (i32, i32) {
    %c0_i32 = arith.constant 0 : i32
    %c0_i32_0 = arith.constant 0 : i32
    return %arg0, %c0_i32 : i32, i32
  }
}

</mosaic_0001>

<bundles_post_ra>
// kernel: autorec_forward.1
= control target key start
LH: loop header
LB: loop body
LE: loop exit
PB: predicated region body
PF: predicated region fallthrough
CT: control target
= control target key end

     0   :  { %s1671_s0 = inlined_call_operand.vmem [shape: bf16[24,384], index: 0, kind: input, shape index: {}]   ;;  %s1672_s1 = inlined_call_operand.vmem [shape: bf16[384,256], index: 1, kind: input, shape index: {}]   ;;  %s1673_s2 = inlined_call_operand.vmem [shape: f32[1,256], index: 2, kind: input, shape index: {}]   ;;  %s1674_s3 = inlined_call_operand.vmem [shape: bf16[256,384], index: 3, kind: input, shape index: {}]   ;;  %s1675_s4 = inlined_call_operand.vmem [shape: f32[1,384], index: 4, kind: input, shape index: {}]   ;;  %s1676_s5 = inlined_call_operand.hbm [shape: f32[24,384], index: 5, kind: output, shape index: {}]  }
   0x1   :  { %v1112_v0 = vld [vmem:[%s1672_s1 + $0x4] ss:$8 sps:$4 sm:$0xff]   ;;  %v1114_v1 = vld [vmem:[%s1672_s1] ss:$8 sps:$4 sm:$0xff]   ;;  %v1115_v2 = vld [vmem:[%s1672_s1 + $0x14] ss:$8 sps:$4 sm:$0xff]  }
   0x2   :  { %355 = vmatprep.subr.bf16.mxu0 %v1112_v0  ;;  %v1117_v3 = vld [vmem:[%s1672_s1 + $0x10] ss:$8 sps:$4 sm:$0xff]   ;;  %v1118_v4 = vld [vmem:[%s1672_s1 + $0x24] ss:$8 sps:$4 sm:$0xff]   ;;  %v1120_v5 = vld [vmem:[%s1672_s1 + $0x20] ss:$8 sps:$4 sm:$0xff]  }
   0x3   :  { %356 = vmatpush1.bf16.msra.mxu0 %v1114_v1  ;;  %v1121_v6 = vld [vmem:[%s1672_s1 + $0x34] ss:$8 sps:$4 sm:$0xff]   ;;  %v1123_v7 = vld [vmem:[%s1672_s1 + $0x30] ss:$8 sps:$4 sm:$0xff]   ;;  %v1124_v8 = vld [vmem:[%s1672_s1 + $0x44] ss:$8 sps:$4 sm:$0xff]  }
   0x4   :  { %357 = vmatprep.subr.bf16.mxu0 %v1115_v2  ;;  %v1126_v9 = vld [vmem:[%s1672_s1 + $0x40] ss:$8 sps:$4 sm:$0xff]   ;;  %v1127_v10 = vld [vmem:[%s1672_s1 + $0x54] ss:$8 sps:$4 sm:$0xff]   ;;  %v1129_v11 = vld [vmem:[%s1672_s1 + $0x50] ss:$8 sps:$4 sm:$0xff]  }
   0x5   :  { %v1130_v12 = vld [vmem:[%s1672_s1 + $0x64] ss:$8 sps:$4 sm:$0xff]   ;;  %v1132_v14 = vld [vmem:[%s1672_s1 + $0x60] ss:$8 sps:$4 sm:$0xff]   ;;  %v1133_v15 = vld [vmem:[%s1672_s1 + $0x74] ss:$8 sps:$4 sm:$0xff]  }
   0x6   :  { %v1162_v13 = vld [vmem:[%s1671_s0 + $0x4] ss:$12 sps:$4 sm:$0xff]   ;;  %v1138_v18 = vld [vmem:[%s1672_s1 + $0x80] ss:$8 sps:$4 sm:$0xff]   ;;  %v1139_v19 = vld [vmem:[%s1672_s1 + $0x94] ss:$8 sps:$4 sm:$0xff]  }
   0x7   :  { %358 = vmatpush1.bf16.msra.mxu0 %v1117_v3  ;;  %387 = vmatprep.mubr.bf16.mxu0 %v1162_v13  ;;  %v1135_v16 = vld [vmem:[%s1672_s1 + $0x70] ss:$8 sps:$4 sm:$0xff]   ;;  %v1136_v17 = vld [vmem:[%s1672_s1 + $0x84] ss:$8 sps:$4 sm:$0xff]   ;;  %v1194_v24 = vld [vmem:[%s1674_s3 + $0x1c] ss:$12 sps:$4 sm:$0xff]  }
   0x8   :  { %359 = vmatprep.subr.bf16.mxu0 %v1118_v4  ;;  %v1141_v20 = vld [vmem:[%s1672_s1 + $0x90] ss:$8 sps:$4 sm:$0xff]   ;;  %v1142_v21 = vld [vmem:[%s1672_s1 + $0xa4] ss:$8 sps:$4 sm:$0xff]   ;;  %v1144_v25 = vld [vmem:[%s1672_s1 + $0xa0] ss:$8 sps:$4 sm:$0xff]  }
   0x9   :  { %v1191_v22 = vld [vmem:[%s1674_s3 + $0x4] ss:$12 sps:$4 sm:$0xff]   ;;  %v1193_v23 = vld [vmem:[%s1674_s3] ss:$12 sps:$4 sm:$0xff]   ;;  %v1145_v27 = vld [vmem:[%s1672_s1 + $0xb4] ss:$8 sps:$4 sm:$0xff]  }
   0xa   :  { %834 = vmatprep.subr.bf16.mxu1 %v1191_v22  ;;  %v1196_v26 = vld [vmem:[%s1674_s3 + $0x18] ss:$12 sps:$4 sm:$0xff]   ;;  %v1197_v28 = vld [vmem:[%s1674_s3 + $0x34] ss:$12 sps:$4 sm:$0xff]   ;;  %v1199_v30 = vld [vmem:[%s1674_s3 + $0x30] ss:$12 sps:$4 sm:$0xff]  }
   0xb   :  { %360 = vmatpush1.bf16.msra.mxu0 %v1120_v5  ;;  %835 = vmatpush1.bf16.msra.mxu1 %v1193_v23  ;;  %v1147_v29 = vld [vmem:[%s1672_s1 + $0xb0] ss:$8 sps:$4 sm:$0xff]   ;;  %v1148_v31 = vld [vmem:[%s1672_s1 + $0xc4] ss:$8 sps:$4 sm:$0xff]   ;;  %v1150_v33 = vld [vmem:[%s1672_s1 + $0xc0] ss:$8 sps:$4 sm:$0xff]  }
   0xc   :  { %361 = vmatprep.subr.bf16.mxu0 %v1121_v6  ;;  %836 = vmatprep.subr.bf16.mxu1 %v1194_v24  ;;  %v1200_v32 = vld [vmem:[%s1674_s3 + $0x4c] ss:$12 sps:$4 sm:$0xff]   ;;  %v1202_v34 = vld [vmem:[%s1674_s3 + $0x48] ss:$12 sps:$4 sm:$0xff]   ;;  %v1203_v36 = vld [vmem:[%s1674_s3 + $0x64] ss:$12 sps:$4 sm:$0xff]  }
   0xd   :  { %v1151_v35 = vld [vmem:[%s1672_s1 + $0xd4] ss:$8 sps:$4 sm:$0xff]   ;;  %v1153_v37 = vld [vmem:[%s1672_s1 + $0xd0] ss:$8 sps:$4 sm:$0xff]   ;;  %v1205_v38 = vld [vmem:[%s1674_s3 + $0x60] ss:$12 sps:$4 sm:$0xff]  }
   0xe   :  { %v1154_v39 = vld [vmem:[%s1672_s1 + $0xe4] ss:$8 sps:$4 sm:$0xff]   ;;  %v1206_v40 = vld [vmem:[%s1674_s3 + $0x7c] ss:$12 sps:$4 sm:$0xff]   ;;  %v1209_v44 = vld [vmem:[%s1674_s3 + $0x94] ss:$12 sps:$4 sm:$0xff]  }
   0xf   :  { %362 = vmatpush1.bf16.msra.mxu0 %v1123_v7  ;;  %837 = vmatpush1.bf16.msra.mxu1 %v1196_v26  ;;  %v1156_v41 = vld [vmem:[%s1672_s1 + $0xe0] ss:$8 sps:$4 sm:$0xff]   ;;  %v1208_v42 = vld [vmem:[%s1674_s3 + $0x78] ss:$12 sps:$4 sm:$0xff]   ;;  %v1157_v43 = vld [vmem:[%s1672_s1 + $0xf4] ss:$8 sps:$4 sm:$0xff]  }
  0x10   :  { %363 = vmatprep.subr.bf16.mxu0 %v1124_v8  ;;  %838 = vmatprep.subr.bf16.mxu1 %v1197_v28  ;;  %v1159_v45 = vld [vmem:[%s1672_s1 + $0xf0] ss:$8 sps:$4 sm:$0xff]   ;;  %v1165_v47 = vld [vmem:[%s1672_s1 + $0x104] ss:$8 sps:$4 sm:$0xff]  }
  0x11   :  { %v1211_v46 = vld [vmem:[%s1674_s3 + $0x90] ss:$12 sps:$4 sm:$0xff]   ;;  %v1212_v49 = vld [vmem:[%s1674_s3 + $0xac] ss:$12 sps:$4 sm:$0xff]  }
  0x12   :  { %v26_v48 = vld [vmem:[%s1671_s0 + $0x18] sm:$0xff]  ;;  %v1160_v50 = vld [vmem:[%s1671_s0] ss:$12 sps:$4 sm:$0xff]  }
  0x13   :  { %364 = vmatpush1.bf16.msra.mxu0 %v1126_v9  ;;  %839 = vmatpush1.bf16.msra.mxu1 %v1199_v30 }
  0x14   :  { %365 = vmatprep.subr.bf16.mxu0 %v1127_v10  ;;  %840 = vmatprep.subr.bf16.mxu1 %v1200_v32 }
  0x17   :  { %366 = vmatpush1.bf16.msra.mxu0 %v1129_v11  ;;  %841 = vmatpush1.bf16.msra.mxu1 %v1202_v34 }
  0x18   :  { %367 = vmatprep.subr.bf16.mxu0 %v1130_v12  ;;  %842 = vmatprep.subr.bf16.mxu1 %v1203_v36 }
  0x1b   :  { %368 = vmatpush1.bf16.msra.mxu0 %v1132_v14  ;;  %843 = vmatpush1.bf16.msra.mxu1 %v1205_v38 }
  0x1c   :  { %369 = vmatprep.subr.bf16.mxu0 %v1133_v15  ;;  %844 = vmatprep.subr.bf16.mxu1 %v1206_v40 }
  0x1f   :  { %370 = vmatpush1.bf16.msra.mxu0 %v1135_v16  ;;  %845 = vmatpush1.bf16.msra.mxu1 %v1208_v42 }
  0x20   :  { %371 = vmatprep.subr.bf16.mxu0 %v1136_v17  ;;  %846 = vmatprep.subr.bf16.mxu1 %v1209_v44 }
  0x23   :  { %372 = vmatpush1.bf16.msra.mxu0 %v1138_v18 }
  0x24   :  { %373 = vmatprep.subr.bf16.mxu0 %v1139_v19 }
  0x27   :  { %374 = vmatpush1.bf16.msra.mxu0 %v1141_v20 }
  0x28   :  { %375 = vmatprep.subr.bf16.mxu0 %v1142_v21 }
  0x2b   :  { %376 = vmatpush1.bf16.msra.mxu0 %v1144_v25 }
  0x2c   :  { %377 = vmatprep.subr.bf16.mxu0 %v1145_v27 }
  0x2f   :  { %378 = vmatpush1.bf16.msra.mxu0 %v1147_v29 }
  0x30   :  { %379 = vmatprep.subr.bf16.mxu0 %v1148_v31 }
  0x33   :  { %380 = vmatpush1.bf16.msra.mxu0 %v1150_v33 }
  0x34   :  { %381 = vmatprep.subr.bf16.mxu0 %v1151_v35 }
  0x37   :  { %382 = vmatpush1.bf16.msra.mxu0 %v1153_v37 }
  0x38   :  { %383 = vmatprep.subr.bf16.mxu0 %v1154_v39 }
  0x3b   :  { %384 = vmatpush1.bf16.msra.mxu0 %v1156_v41 }
  0x3c   :  { %385 = vmatprep.subr.bf16.mxu0 %v1157_v43 }
  0x3d   :  { %10 = vsyncpa [#allocation3], 0  ;;  %v1163_v51 = vld [vmem:[%s1672_s1 + $0x100] ss:$8 sps:$4 sm:$0xff]   ;;  %v962_v52 = vcombine.high %v26_v48, %v26_v48  ;;  %847 = vmatpush1.bf16.msra.mxu1 %v1211_v46  ;;  %v1168_v53 = vld [vmem:[%s1672_s1 + $0x114] ss:$8 sps:$4 sm:$0xff]   ;;  %v961_v57 = vcombine.low %v26_v48, %v26_v48  ;;  %v78_v25 = vlaneseq }
  0x3e   :  { %848 = vmatprep.subr.bf16.mxu1 %v1212_v49  ;;  %v1214_v54 = vld [vmem:[%s1674_s3 + $0xa8] ss:$12 sps:$4 sm:$0xff]   ;;  %v1166_v55 = vld [vmem:[%s1672_s1 + $0x110] ss:$8 sps:$4 sm:$0xff]   ;;  %v1171_v56 = vld [vmem:[%s1672_s1 + $0x124] ss:$8 sps:$4 sm:$0xff]  }
  0x3f   :  { %386 = vmatpush1.bf16.msra.mxu0 %v1159_v45  ;;  %v1169_v58 = vld [vmem:[%s1672_s1 + $0x120] ss:$8 sps:$4 sm:$0xff]   ;;  %v1174_v59 = vld [vmem:[%s1672_s1 + $0x134] ss:$8 sps:$4 sm:$0xff]   ;;  %v1172_v60 = vld [vmem:[%s1672_s1 + $0x130] ss:$8 sps:$4 sm:$0xff]  }
  0x40   :  { %406 = vmatprep.subr.bf16.mxu0 %v1165_v47  ;;  %v1303_v61 = vmov 0   ;;  %v1177_v62 = vld [vmem:[%s1672_s1 + $0x144] ss:$8 sps:$4 sm:$0xff]   ;;  %v1175_v63 = vld [vmem:[%s1672_s1 + $0x140] ss:$8 sps:$4 sm:$0xff]   ;;  %v1595_v26 = vshrl.u32 %v78_v25, 7 }
  0x41   :  { %849 = vmatpush1.bf16.msra.mxu1 %v1214_v54  ;;  %v1180_v0 = vld [vmem:[%s1672_s1 + $0x154] ss:$8 sps:$4 sm:$0xff]   ;;  %v1178_v1 = vld [vmem:[%s1672_s1 + $0x150] ss:$8 sps:$4 sm:$0xff]   ;;  %v1185_v2 = vld [vmem:[%s1672_s1 + $0x164] ss:$8 sps:$4 sm:$0xff]  }
  0x42   :  { %388 = vmatmul.mubr.bf16.vlgmr.msra.gmra.mrb[0].mxu0 %v1160_v50  ;;  %v1183_v3 = vld [vmem:[%s1672_s1 + $0x160] ss:$8 sps:$4 sm:$0xff]   ;;  %v1188_v4 = vld [vmem:[%s1672_s1 + $0x174] ss:$8 sps:$4 sm:$0xff]   ;;  %v1186_v5 = vld [vmem:[%s1672_s1 + $0x170] ss:$8 sps:$4 sm:$0xff]  }
  0x43   :  { %407 = vmatpush1.bf16.msra.mxu0 %v1163_v51  ;;  %397 = vmatprep.mubr.bf16.mxu0 %v962_v52  ;;  %v1189_v6 = vld [vmem:[%s1671_s0 + $0x8] ss:$12 sps:$4 sm:$0xff]   ;;  %v1190_v7 = vld [vmem:[%s1671_s0 + $0x20] ss:$0 sps:$4 sm:$0xff]   ;;  %v1215_v8 = vld [vmem:[%s1674_s3 + $0xc4] ss:$12 sps:$4 sm:$0xff]  }
  0x44   :  { %408 = vmatprep.subr.bf16.mxu0 %v1168_v53  ;;  %v1217_v9 = vld [vmem:[%s1674_s3 + $0xc0] ss:$12 sps:$4 sm:$0xff]   ;;  %850 = vmatprep.subr.bf16.mxu1 %v1215_v8  ;;  %v1218_v10 = vld [vmem:[%s1674_s3 + $0xdc] ss:$12 sps:$4 sm:$0xff]   ;;  %v1220_v11 = vld [vmem:[%s1674_s3 + $0xd8] ss:$12 sps:$4 sm:$0xff]  }
  0x45   :  { %851 = vmatpush1.bf16.msra.mxu1 %v1217_v9  ;;  %v1221_v12 = vld [vmem:[%s1674_s3 + $0xf4] ss:$12 sps:$4 sm:$0xff]   ;;  %v1223_v13 = vld [vmem:[%s1674_s3 + $0xf0] ss:$12 sps:$4 sm:$0xff]   ;;  %v1224_v14 = vld [vmem:[%s1674_s3 + $0x10c] ss:$12 sps:$4 sm:$0xff]  }
  0x46   :  { %852 = vmatprep.subr.bf16.mxu1 %v1218_v10  ;;  %v1226_v15 = vld [vmem:[%s1674_s3 + $0x108] ss:$12 sps:$4 sm:$0xff]   ;;  %v1227_v16 = vld [vmem:[%s1674_s3 + $0x124] ss:$12 sps:$4 sm:$0xff]   ;;  %v1229_v17 = vld [vmem:[%s1674_s3 + $0x120] ss:$12 sps:$4 sm:$0xff]  }
  0x47   :  { %409 = vmatpush1.bf16.msra.mxu0 %v1166_v55  ;;  %v1230_v18 = vld [vmem:[%s1674_s3 + $0x13c] ss:$12 sps:$4 sm:$0xff]   ;;  %v1232_v19 = vld [vmem:[%s1674_s3 + $0x138] ss:$12 sps:$4 sm:$0xff]   ;;  %v1233_v20 = vld [vmem:[%s1674_s3 + $0x154] ss:$12 sps:$4 sm:$0xff]  }
  0x48   :  { %410 = vmatprep.subr.bf16.mxu0 %v1171_v56  ;;  %v1235_v21 = vld [vmem:[%s1674_s3 + $0x150] ss:$12 sps:$4 sm:$0xff]   ;;  %v1236_v22 = vld [vmem:[%s1674_s3 + $0x16c] ss:$12 sps:$4 sm:$0xff]   ;;  %v1238_v23 = vld [vmem:[%s1674_s3 + $0x168] ss:$12 sps:$4 sm:$0xff]  }
  0x49   :  { %853 = vmatpush1.bf16.msra.mxu1 %v1220_v11  ;;  %v1239_v24 = vld [vmem:[%s1674_s3 + $0xc8] ss:$12 sps:$4 sm:$0xff]   ;;  %v80_v27 = vsub.s32 0, %v1595_v26  ;;  %v76_v28 = vld [vmem:[%s1673_s2] sm:$0x3]  ;;  %v84_v29 = vsub.s32 1, %v1595_v26 }
  0x4a   :  { %398 = vmatmul.mubr.bf16.gmra.mrb[4].mxu0 %v961_v57  ;;  %854 = vmatprep.subr.bf16.mxu1 %v1221_v12  ;;  %v1242_v8 = vld [vmem:[%s1674_s3 + $0x20] ss:$12 sps:$4 sm:$0xff]   ;;  %v1243_v10 = vld [vmem:[%s1674_s3 + $0xf8] ss:$12 sps:$4 sm:$0xff]  }
  0x4b   :  { %411 = vmatpush1.bf16.msra.mxu0 %v1169_v58  ;;  %438 = vmatprep.mubr.bf16.mxu0 %v1303_v61  ;;  %v81_v30 = vrot.slane %v76_v28, %v80_v27  ;;  %v85_v31 = vrot.slane %v76_v28, %v84_v29  ;;  %v561_v25 = vld [vmem:[%s1675_s4] sm:$0x7] }
  0x4c   :  { %412 = vmatprep.subr.bf16.mxu0 %v1174_v59  ;;  %v566_v28 = vrot.slane %v561_v25, %v80_v27 }
  0x4d   :  { %855 = vmatpush1.bf16.msra.mxu1 %v1223_v13  ;;  %v1244_v13 = vld [vmem:[%s1674_s3 + $0x38] ss:$12 sps:$4 sm:$0xff]  }
  0x4e   :  { %856 = vmatprep.subr.bf16.mxu1 %v1224_v14 }
  0x4f   :  { %413 = vmatpush1.bf16.msra.mxu0 %v1172_v60 }
  0x50   :  { %414 = vmatprep.subr.bf16.mxu0 %v1177_v62 }
  0x51   :  { %857 = vmatpush1.bf16.msra.mxu1 %v1226_v15  ;;  %v1245_v15 = vld [vmem:[%s1674_s3 + $0x110] ss:$12 sps:$4 sm:$0xff]  }
  0x52   :  { %858 = vmatprep.subr.bf16.mxu1 %v1227_v16  ;;  %v1246_v16 = vld [vmem:[%s1674_s3 + $0x50] ss:$12 sps:$4 sm:$0xff]  }
  0x53   :  { %415 = vmatpush1.bf16.msra.mxu0 %v1175_v63 }
  0x54   :  { %416 = vmatprep.subr.bf16.mxu0 %v1180_v0 }
  0x55   :  { %859 = vmatpush1.bf16.msra.mxu1 %v1229_v17  ;;  %v1247_v17 = vld [vmem:[%s1674_s3 + $0x128] ss:$12 sps:$4 sm:$0xff]  }
  0x56   :  { %860 = vmatprep.subr.bf16.mxu1 %v1230_v18  ;;  %v1248_v18 = vld [vmem:[%s1674_s3 + $0x68] ss:$12 sps:$4 sm:$0xff]  }
  0x57   :  { %417 = vmatpush1.bf16.msra.mxu0 %v1178_v1 }
  0x58   :  { %418 = vmatprep.subr.bf16.mxu0 %v1185_v2 }
  0x59   :  { %861 = vmatpush1.bf16.msra.mxu1 %v1232_v19  ;;  %v1249_v19 = vld [vmem:[%s1674_s3 + $0x140] ss:$12 sps:$4 sm:$0xff]  }
  0x5a   :  { %862 = vmatprep.subr.bf16.mxu1 %v1233_v20  ;;  %v1250_v20 = vld [vmem:[%s1674_s3 + $0x80] ss:$12 sps:$4 sm:$0xff]  }
  0x5b   :  { %419 = vmatpush1.bf16.msra.mxu0 %v1183_v3 }
  0x5c   :  { %420 = vmatprep.subr.bf16.mxu0 %v1188_v4 }
  0x5d   :  { %863 = vmatpush1.bf16.msra.mxu1 %v1235_v21  ;;  %v1251_v21 = vld [vmem:[%s1674_s3 + $0x158] ss:$12 sps:$4 sm:$0xff]  }
  0x5e   :  { %864 = vmatprep.subr.bf16.mxu1 %v1236_v22  ;;  %v1252_v22 = vld [vmem:[%s1674_s3 + $0x98] ss:$12 sps:$4 sm:$0xff]  }
  0x5f   :  { %421 = vmatpush1.bf16.msra.mxu0 %v1186_v5 }
  0x61   :  { %865 = vmatpush1.bf16.msra.mxu1 %v1238_v23  ;;  %v1253_v23 = vld [vmem:[%s1674_s3 + $0x170] ss:$12 sps:$4 sm:$0xff]  }
  0x62   :  { %439 = vmatmul.mubr.bf16.vlgmr.msra.gmra.mrb[0].mxu0 %v1189_v6  ;;  %1066 = vmatprep.subr.bf16.mxu1 %v1239_v24  ;;  %v1240_v6 = vld [vmem:[%s1674_s3 + $0x8] ss:$12 sps:$4 sm:$0xff]   ;;  %v1254_v24 = vld [vmem:[%s1674_s3 + $0xb0] ss:$12 sps:$4 sm:$0xff]  }
  0x63   :  { %448 = vmatprep.mubr.bf16.mxu0 %v1303_v61 }
  0x6a   :  { %449 = vmatmul.mubr.bf16.gmra.mrb[4].mxu0 %v1190_v7  ;;  %v1241_v7 = vld [vmem:[%s1674_s3 + $0xe0] ss:$12 sps:$4 sm:$0xff]   ;;  %s1304_s3 = smov [#allocation2]  }
  0x6b   :  { %s947_s4 = sshll.u32 %s1304_s3, 4  ;;  %s948_s4 = int_to_ptr.vmem [resolvable:$true] %s947_s4 }
  0x6c   :  { %s1279_s16 = scalar_lea.vmem %s948_s4, 1152  ;;  %p1284_p1 = scmp.lt.s32.totalorder %s948_s4, %s948_s4 }
  0x6d   :  { %p1280_p0 = scmp.ne.s32.totalorder %s948_s4, %s1279_s16  ;;  %p1285_p2 = scmp.lt.s32.totalorder %s1279_s16, %s1279_s16 }
  0x6f   :  { %p1286_p3 = por %p1285_p2, %p1284_p1 }
  0x71   :  { %p1287_p4 = pnand %p1286_p3, %p1280_p0 }
 0x135   :  { %v440_v32 = vpop.f32.mrb[0].mxu0 }
 0x136   :  { %v1094_v33 = vadd.f32 %v440_v32, %v81_v30  ;;  %v442_v34 = vpop.f32.mrb[1].mxu0 }
 0x137   :  { %v1095_v35 = vadd.f32 %v442_v34, %v85_v31  ;;  %v444_v36 = vpop.f32.mrb[2].mxu0 }
 0x138   :  { %v1012_v37 = vmul.f32 -1.442695, %v1094_v33  ;;  %v1096_v38 = vadd.f32 %v444_v36, %v81_v30  ;;  %v446_v39 = vpop.f32.mrb[3].mxu0 }
 0x139   :  { %v1013_v40 = vmul.f32 -1.442695, %v1095_v35  ;;  %v1097_v41 = vadd.f32 %v446_v39, %v85_v31 }
 0x13a   :  { %1255 = vpow2.f32 %v1012_v37  ;;  %v1014_v42 = vmul.f32 -1.442695, %v1096_v38 }
 0x13b   :  { %1257 = vpow2.f32 %v1013_v40  ;;  %v1015_v43 = vmul.f32 -1.442695, %v1097_v41 }
 0x13c   :  { %1259 = vpow2.f32 %v1014_v42 }
 0x13d   :  { %1261 = vpow2.f32 %v1015_v43  ;;  %v450_v44 = vpop.f32.mrb[4].mxu0 }
 0x13e   :  { %v1098_v45 = vadd.f32 %v450_v44, %v81_v30  ;;  %v452_v46 = vpop.f32.mrb[5].mxu0  ;;  %v570_v30 = vrot.slane %v561_v25, %v84_v29  ;;  %v573_v29 = vsub.s32 2, %v1595_v26 }
 0x13f   :  { %v1099_v47 = vadd.f32 %v452_v46, %v85_v31  ;;  %v454_v48 = vpop.f32.mrb[6].mxu0 }
 0x140   :  { %v1016_v49 = vmul.f32 -1.442695, %v1098_v45  ;;  %v455_v50 = vpop.f32.mrb[7].mxu0  ;;  %v574_v45 = vrot.slane %v561_v25, %v573_v29 }
 0x141   :  { %v1017_v51 = vmul.f32 -1.442695, %v1099_v47 }
 0x142   :  { %1263 = vpow2.f32 %v1016_v49 }
 0x143   :  { %1265 = vpow2.f32 %v1017_v51 }
 0x144   :  { %v1256_v52 = vpop.eup %1255 }
 0x145   :  { %v1258_v53 = vpop.eup %1257  ;;  %v475_v54 = vadd.f32 1.0, %v1256_v52 }
 0x146   :  { %v1260_v55 = vpop.eup %1259  ;;  %v476_v56 = vadd.f32 1.0, %v1258_v53 }
 0x147   :  { %v1262_v57 = vpop.eup %1261  ;;  %1267 = vrcp.f32 %v475_v54  ;;  %v477_v58 = vadd.f32 1.0, %v1260_v55 }
 0x148   :  { %1269 = vrcp.f32 %v476_v56  ;;  %v478_v59 = vadd.f32 1.0, %v1262_v57 }
 0x149   :  { %1271 = vrcp.f32 %v477_v58 }
 0x14a   :  { %1273 = vrcp.f32 %v478_v59 }
 0x14c   :  { %v1264_v60 = vpop.eup %1263 }
 0x14d   :  { %v1266_v61 = vpop.eup %1265  ;;  %v479_v62 = vadd.f32 1.0, %v1264_v60 }
 0x14e   :  { %v480_v63 = vadd.f32 1.0, %v1266_v61 }
 0x150   :  { %1275 = vrcp.f32 %v480_v63 }
 0x151   :  { %v1268_v0 = vpop.eup %1267  ;;  %1277 = vrcp.f32 %v479_v62 }
 0x152   :  { %v1270_v1 = vpop.eup %1269 }
 0x153   :  { %v1272_v2 = vpop.eup %1271 }
 0x154   :  { %v1274_v3 = vpop.eup %1273  ;;  %v493_v4 = vpack.c.bf16 %v1272_v2, %v1268_v0 }
 0x155   :  { %v494_v5 = vpack.c.bf16 %v1274_v3, %v1270_v1 }
 0x157   :  { %866 = vmatprep.mubr.bf16.mxu1 %v494_v5 }
 0x158   :  { %867 = vmatmul.mubr.bf16.vlgmr.msra.gmra.mrb[0].mxu1 %v493_v4 }
 0x159   :  { %1067 = vmatpush3.bf16.msra.mxu1 %v1240_v6 }
 0x15a   :  { %v1276_v9 = vpop.eup %1275  ;;  %1068 = vmatprep.subr.bf16.mxu1 %v1241_v7 }
 0x15b   :  { %v1278_v11 = vpop.eup %1277  ;;  %v496_v12 = vpack.c.bf16 %v1276_v9, %v1276_v9 }
 0x15c   :  { %v495_v14 = vpack.c.bf16 %v1278_v11, %v1278_v11 }
 0x15d   :  { %1069 = vmatpush3.bf16.msra.mxu1 %v1242_v8  ;;  %876 = vmatprep.mubr.bf16.mxu1 %v496_v12 }
 0x15e   :  { %1070 = vmatprep.subr.bf16.mxu1 %v1243_v10 }
 0x160   :  { %877 = vmatmul.mubr.bf16.gmra.mrb[4].mxu1 %v495_v14 }
 0x161   :  { %1071 = vmatpush3.bf16.msra.mxu1 %v1244_v13  ;;  %917 = vmatprep.mubr.bf16.mxu1 %v494_v5 }
 0x162   :  { %1072 = vmatprep.subr.bf16.mxu1 %v1245_v15 }
 0x165   :  { %1073 = vmatpush3.bf16.msra.mxu1 %v1246_v16 }
 0x166   :  { %1074 = vmatprep.subr.bf16.mxu1 %v1247_v17 }
 0x169   :  { %1075 = vmatpush3.bf16.msra.mxu1 %v1248_v18 }
 0x16a   :  { %1076 = vmatprep.subr.bf16.mxu1 %v1249_v19 }
 0x16d   :  { %1077 = vmatpush3.bf16.msra.mxu1 %v1250_v20 }
 0x16e   :  { %1078 = vmatprep.subr.bf16.mxu1 %v1251_v21 }
 0x171   :  { %1079 = vmatpush3.bf16.msra.mxu1 %v1252_v22 }
 0x172   :  { %1080 = vmatprep.subr.bf16.mxu1 %v1253_v23 }
 0x175   :  { %1081 = vmatpush3.bf16.msra.mxu1 %v1254_v24 }
 0x178   :  { %918 = vmatmul.mubr.bf16.vlgmr.msra.gmra.mrb[8].mxu1 %v493_v4 }
 0x179   :  { %925 = vmatprep.mubr.bf16.mxu1 %v496_v12 }
 0x180   :  { %926 = vmatmul.mubr.bf16.gmra.mrb[12].mxu1 %v495_v14 }
 0x22b   :  { %v868_v31 = vpop.f32.mrb[0].mxu1 }
 0x22c   :  { %v869_v32 = vadd.f32 %v868_v31, %v566_v28  ;;  %v870_v33 = vpop.f32.mrb[1].mxu1 }
 0x22d   :  { %v871_v34 = vadd.f32 %v870_v33, %v570_v30  ;;  %v872_v35 = vpop.f32.mrb[2].mxu1 }
 0x22e   :  { %933 = vst [vmem:[#allocation2] sm:$0xff] %v869_v32  ;;  %v873_v36 = vadd.f32 %v872_v35, %v566_v28  ;;  %v874_v37 = vpop.f32.mrb[3].mxu1 }
 0x22f   :  { %934 = vst [vmem:[#allocation2 + $0x8] sm:$0xff] %v871_v34  ;;  %v875_v38 = vadd.f32 %v874_v37, %v570_v30 }
 0x230   :  { %936 = vst [vmem:[#allocation2 + $0x18] sm:$0xff] %v873_v36 }
 0x231   :  { %937 = vst [vmem:[#allocation2 + $0x20] sm:$0xff] %v875_v38 }
 0x233   :  { %v878_v39 = vpop.f32.mrb[4].mxu1 }
 0x234   :  { %v879_v40 = vadd.f32 %v878_v39, %v566_v28  ;;  %v880_v41 = vpop.f32.mrb[5].mxu1 }
 0x235   :  { %v881_v42 = vadd.f32 %v880_v41, %v570_v30  ;;  %v882_v27 = vpop.f32.mrb[6].mxu1 }
 0x236   :  { %939 = vst [vmem:[#allocation2 + $0x30] sm:$0xff] %v879_v40  ;;  %v883_v43 = vpop.f32.mrb[7].mxu1 }
 0x237   :  { %940 = vst [vmem:[#allocation2 + $0x38] sm:$0xff] %v881_v42 }
 0x24b   :  { %v1082_v44 = vpop.f32.mrb[8].mxu1 }
 0x24c   :  { %v1083_v46 = vpop.f32.mrb[9].mxu1 }
 0x24d   :  { %v1084_v47 = vadd.f32 %v1083_v46, %v1082_v44  ;;  %v1085_v48 = vpop.f32.mrb[10].mxu1 }
 0x24e   :  { %v1086_v49 = vpop.f32.mrb[11].mxu1 }
 0x24f   :  { %v920_v50 = vadd.f32 %v1084_v47, %v574_v45  ;;  %v1087_v51 = vadd.f32 %v1086_v49, %v1085_v48 }
 0x251   :  { %935 = vst [vmem:[#allocation2 + $0x10] sm:$0xff] %v920_v50  ;;  %v923_v52 = vadd.f32 %v1087_v51, %v574_v45 }
 0x253   :  { %938 = vst [vmem:[#allocation2 + $0x28] sm:$0xff] %v923_v52  ;;  %v1088_v53 = vpop.f32.mrb[12].mxu1 }
 0x254   :  { %v1089_v54 = vpop.f32.mrb[13].mxu1 }
 0x255   :  { %v1090_v55 = vadd.f32 %v1089_v54, %v1088_v53  ;;  %v1091_v56 = vpop.f32.mrb[14].mxu1 }
 0x256   :  { %v1092_v57 = vpop.f32.mrb[15].mxu1 }
 0x257   :  { %v928_v26 = vadd.f32 %v1090_v55, %v574_v45 }
 0x259   :  { %941 = vst [vmem:[#allocation2 + $0x40] sm:$0xff] %v928_v26 }
 0x25a   :  { %1290 = shalt.err (!%p1287_p4)
}
 0x25b   :  { %s1291_s19 = scalar_lea.hbm %s1676_s5, 1152 }
 0x25c   :  { %p1292_p5 = scmp.ne.s32.totalorder %s1676_s5, %s1291_s19  ;;  %p1295_p6 = scmp.lt.u32.totalorder %s1291_s19, %s1676_s5 }
 0x25e   :  { %p1297_p7 = pnand %p1295_p6, %p1292_p5 }
 0x260   :  { %1300 = shalt.err (!%p1297_p7)
}
 0x261   :  { %s1305_s24 = smov 384   ;;  %s1306_s25 = smov 24  }
 0x262   :  { %953 = dma.vmem_to_hbm [thread:$0]  %s948_s4, 1152, %s1676_s5, [#allocation3], %s1305_s24, %s1305_s24, %s1306_s25  }
 0x263   :  { %1301 = dma.done.wait [#allocation3], 1152  }
 0x264   :  { %1302 = vsyncadd [#allocation3], 4294966144 }
 0x265   :  { %957 = vsyncpa [#allocation3], 1 }

</bundles_post_ra>
